<compile_context>
chip_gen: v7x
topology: tpu7x:2x2x1
jax: 0.10.0
libtpu: 0.0.40
codegen_flags: <defaults>
</compile_context>

<pallas_src>
import math

import numpy as np
import jax
import jax.numpy as jnp
from jax.experimental import pallas as pl
from jax.experimental.pallas import tpu as pltpu


# ----------------------------- weight packing --------------------------------
def _pack_layer(w, b, R):
    """Pack ConvTranspose1d(k=4, s=2, p=1) into one fused block weight.

    Layer input is phase-packed channel-major: row block r (< R) of column m
    holds the signal at unpacked index R*m + r; the output has 2R phases.
      F    : (2R*Cout + 2*Cg, R*Cin), Cg = max(Cout, 8)
             rows [0, 2R*Cout)           same-column taps ("A")
             rows [2R*Cout, +Cg)         phase-0 boundary tap  (needs column m-1)
             rows [2R*Cout+Cg, +2Cg)     phase-(2R-1) boundary tap (column m+1)
      bias : (2R*Cout, 1)
    w: (Cin, Cout, 4) torch layout, b: (Cout,).
    """
    w = np.asarray(w, np.float32)
    b = np.asarray(b, np.float32)
    Cin, Cout, K = w.shape
    assert K == 4
    Nout = 2 * R * Cout
    Cg = max(Cout, 8)                       # keep boundary blocks >= 8 sublanes
    F = np.zeros((Nout + 2 * Cg, R * Cin), np.float32)

    def put(row0, r, k):
        F[row0:row0 + Cout, r * Cin:(r + 1) * Cin] = w[:, :, k].T

    # out[2R*m + s]: s even -> W1*x[R*m + s/2]     + W3*x[R*m + s/2 - 1]
    #                s odd  -> W2*x[R*m + (s-1)/2] + W0*x[R*m + (s+1)/2]
    for s in range(2 * R):
        if s % 2 == 0:
            put(s * Cout, s // 2, 1)
            if s >= 2:
                put(s * Cout, s // 2 - 1, 3)
        else:
            put(s * Cout, (s - 1) // 2, 2)
            if s <= 2 * R - 3:
                put(s * Cout, (s + 1) // 2, 0)
    put(Nout, R - 1, 3)                     # boundary: W3 * x[R*m - 1]   (col m-1)
    put(Nout + Cg, 0, 0)                    # boundary: W0 * x[R*(m+1)]   (col m+1)

    bias = np.tile(b, 2 * R).reshape(Nout, 1).astype(np.float32)
    return F, bias


# --------------------------------- kernel -------------------------------------
def _decoder_kernel(x_ref, m_ref, w_ref, b_ref, out_ref):
    P = x_ref[...]                          # (32, W) channel-major block
    W = P.shape[1]
    M = m_ref[...]                          # (2, W) grid-invariant masks
    md = M[0:1, :]                          # 1.0 where position m != 0
    mu = M[1:2, :]                          # 1.0 where position m != L-1
    Wpk = w_ref[...]                        # (136, 32) fused weights, all layers
    Bpk = b_ref[...]                        # (88, 1) biases + layer-3 selects

    def up(p, F, bias, nout, cout, act, seld=None, selu=None):
        cg = max(cout, 8)
        Z = jnp.dot(F, p, preferred_element_type=jnp.float32)   # 1 MXU matmul/layer
        Y = Z[:nout]
        # boundary taps need the neighbouring column; the lane that wraps at
        # the block edge is zeroed by md/mu (block width is a multiple of L).
        Gd = pltpu.roll(Z[nout:nout + cg], shift=1, axis=1)[:cout] * md
        Gu = pltpu.roll(Z[nout + cg:nout + 2 * cg], shift=W - 1, axis=1)[:cout] * mu
        if seld is None:                    # cout multiple of 8 -> aligned slices
            parts = [Y[:cout] + Gd]
            if nout > 2 * cout:
                parts.append(Y[cout:nout - cout])
            parts.append(Y[nout - cout:] + Gu)
            Zc = jnp.concatenate(parts, axis=0)
        else:                               # cout == 1 -> one-hot row selects
            Zc = Y + seld * Gd + selu * Gu
        return act(Zc + bias)

    relu = lambda v: jnp.maximum(v, 0.0)
    sigmoid = lambda v: 1.0 / (1.0 + jnp.exp(-v))

    h = up(P, Wpk[0:64, :], Bpk[0:32, :], 32, 16, relu)          # CT1d 32->16
    h = up(h, Wpk[64:112, :], Bpk[32:64, :], 32, 8, relu)        # CT1d 16->8
    h = up(h, Wpk[112:136, :], Bpk[64:72, :], 8, 1, sigmoid,     # CT1d 8->1
           seld=Bpk[72:80, :], selu=Bpk[80:88, :])
    out_ref[...] = h                        # (8, W): lane-dense output block


# ------------------------------ block planning --------------------------------
def _ceil_to(a, b):
    return -(-a // b) * b


def _plan_blocks(n, L, max_block_cols):
    """Batches per block (bt) and padded batch count.

    Invariants (all paths): bt*L % 128 == 0 (lane-dense), blocks start at batch
    boundaries (roll/mask correctness), bt*L <= max_block_cols when possible.
    """
    g = 128 // math.gcd(L, 128)             # batches per 128-lane alignment unit
    cap = max(g, (max_block_cols // L) // g * g)
    bt = min(cap, _ceil_to(n, g))
    n_pad = _ceil_to(n, bt)
    if n_pad // bt < 2 and bt >= 2 * g:     # prefer >=2 grid steps (v7x has 2 TCs)
        cand = (bt // 2) // g * g
        while cand > g and n_pad % cand != 0:
            cand -= g
        bt = max(cand, g)
        n_pad = _ceil_to(n, bt)
    return bt, n_pad


def _vmem_budget():
    try:
        info = pltpu.get_tpu_info()
        cap = int(getattr(info, "vmem_capacity_bytes", 64 << 20))
    except Exception:
        cap = 64 << 20                      # conservative (v7x-sized) fallback
    return min(96 << 20, (cap * 3) // 4)    # 96 MiB on v5e/v6e, 48 MiB on v7x


# --------------------------------- wrapper -------------------------------------
def decoder_forward(x_ncl, params, *, max_block_cols=None):
    (w1, b1), (w2, b2), (w3, b3) = params
    x = jnp.asarray(x_ncl, jnp.float32)
    N, Cin, L = x.shape
    assert Cin == 32

    vmem_limit = _vmem_budget()
    if max_block_cols is None:
        # ~1.5 KB live VMEM per column (input/output double-buffers + temps)
        max_block_cols = max(1024, min(16384, (vmem_limit // 3) // 1536 // 128 * 128))

    bt, n_pad = _plan_blocks(N, L, max_block_cols)
    wb = bt * L                             # block width: multiple of 128 and of L

    # channel-major, batch flattened into the lane axis: (32, n_pad*L)
    if n_pad != N:
        x = jnp.concatenate([x, jnp.zeros((n_pad - N, Cin, L), jnp.float32)], axis=0)
    x_cm = jnp.transpose(x, (1, 0, 2)).reshape(Cin, n_pad * L)

    # grid-invariant constants (hoisted out of the kernel; fetched once)
    pos = np.arange(wb, dtype=np.int64) % L
    masks = jnp.asarray(np.stack([pos != 0, pos != L - 1]).astype(np.float32))  # (2, wb)

    F1, B1 = _pack_layer(w1, b1, 1)         # (64, 32), (32, 1)
    F2, B2 = _pack_layer(w2, b2, 2)         # (48, 32), (32, 1)
    F3, B3 = _pack_layer(w3, b3, 4)         # (24, 32), (8, 1)
    wpk = jnp.asarray(np.concatenate([F1, F2, F3], axis=0))          # (136, 32)
    seld = np.zeros((8, 1), np.float32); seld[0, 0] = 1.0
    selu = np.zeros((8, 1), np.float32); selu[7, 0] = 1.0
    bpk = jnp.asarray(np.concatenate([B1, B2, B3, seld, selu], axis=0))  # (88, 1)

    grid = (n_pad // bt,)
    out = pl.pallas_call(
        _decoder_kernel,
        out_shape=jax.ShapeDtypeStruct((8, n_pad * L), jnp.float32),
        grid_spec=pltpu.PrefetchScalarGridSpec(
            num_scalar_prefetch=0,
            grid=grid,
            in_specs=[
                pl.BlockSpec((Cin, wb), lambda i: (0, i)),
                pl.BlockSpec(masks.shape, lambda i: (0, 0)),
                pl.BlockSpec(wpk.shape, lambda i: (0, 0)),
                pl.BlockSpec(bpk.shape, lambda i: (0, 0)),
            ],
            out_specs=pl.BlockSpec((8, wb), lambda i: (0, i)),
        ),
        compiler_params=pltpu.CompilerParams(
            dimension_semantics=("parallel",),
            vmem_limit_bytes=int(vmem_limit)),
    )(x_cm, masks, wpk, bpk)

    out = out[:, :N * L]                    # drop padded batches
    # out[s, n*L + m] is the decoder output at time index 8*m + s for batch n
    return jnp.transpose(out.reshape(8, N, L), (1, 2, 0)).reshape(N, 1, 8 * L)


# ---------------- pure-JAX reference (for correctness check only) -------------
def conv_transpose1d_ref(x, W, b):
    # x: (N, Cin, L), W: (Cin, Cout, 4), b: (Cout,), stride=2, padding=1
    N, Cin, L = x.shape
    Cout, K = W.shape[1], W.shape[2]
    full = jnp.zeros((N, Cout, 2 * (L - 1) + K), jnp.float32)
    for k in range(K):
        contrib = jnp.einsum('ncl,cd->ndl', x, W[:, :, k])
        full = full.at[:, :, k:k + 2 * L:2].add(contrib)
    return full[:, :, 1:-1] + b[None, :, None]


def decoder_ref(x, params):
    (w1, b1), (w2, b2), (w3, b3) = params
    h = jax.nn.relu(conv_transpose1d_ref(x, w1, b1))
    h = jax.nn.relu(conv_transpose1d_ref(h, w2, b2))
    return jax.nn.sigmoid(conv_transpose1d_ref(h, w3, b3))


if __name__ == "__main__":
    key = jax.random.PRNGKey(0)
    ks = jax.random.split(key, 7)
    N, L = 2, 8                     # input: (N, 32, L) -> output: (N, 1, 8L)
    x = jax.random.normal(ks[0], (N, 32, L), jnp.float32)

    def init(kw, kb, cin, cout, k=4):
        bound = 1.0 / float(np.sqrt(cin * k))
        w = jax.random.uniform(kw, (cin, cout, k), jnp.float32, -bound, bound)
        b = jax.random.uniform(kb, (cout,), jnp.float32, -bound, bound)
        return w, b

    params = (init(ks[1], ks[2], 32, 16),
              init(ks[3], ks[4], 16, 8),
              init(ks[5], ks[6], 8, 1))

    y = decoder_forward(x, params)
    y = jax.block_until_ready(y)
    assert y.shape == (N, 1, 8 * L)

    y_ref = decoder_ref(x, params)
    np.testing.assert_allclose(np.asarray(y), np.asarray(y_ref),
                               atol=1e-4, rtol=1e-4)
    print("KERNEL_OK")
</pallas_src>

<mosaic_0001>
module attributes {stable_mosaic.version = 11 : i64} {
  func.func @_decoder_kernel(%arg0: i32, %arg1: memref<32x128xf32, #tpu.memory_space<vmem>>, %arg2: memref<2x128xf32, #tpu.memory_space<vmem>>, %arg3: memref<136x32xf32, #tpu.memory_space<vmem>>, %arg4: memref<88x1xf32, #tpu.memory_space<vmem>>, %arg5: memref<8x128xf32, #tpu.memory_space<vmem>>) attributes {dimension_semantics = [#tpu.dimension_semantics<parallel>], iteration_bounds = array<i64: 1>, scalar_prefetch = 0 : i64, scratch_operands = 0 : i64, tpu.core_type = #tpu.core_type<tc>, window_params = [{transform_indices = @transform_0, window_bounds = array<i64: 32, 128>}, {pipeline_mode = #tpu.pipeline_mode<synchronous>, transform_indices = @transform_1, window_bounds = array<i64: 2, 128>}, {pipeline_mode = #tpu.pipeline_mode<synchronous>, transform_indices = @transform_2, window_bounds = array<i64: 136, 32>}, {pipeline_mode = #tpu.pipeline_mode<synchronous>, transform_indices = @transform_3, window_bounds = array<i64: 88, 1>}, {transform_indices = @transform_4, window_bounds = array<i64: 8, 128>}]} {
    %c0 = arith.constant 0 : index
    %c0_0 = arith.constant 0 : index
    %0 = vector.load %arg1[%c0, %c0_0] : memref<32x128xf32, #tpu.memory_space<vmem>>, vector<32x128xf32>
    %c0_1 = arith.constant 0 : index
    %c0_2 = arith.constant 0 : index
    %1 = vector.load %arg2[%c0_1, %c0_2] : memref<2x128xf32, #tpu.memory_space<vmem>>, vector<2x128xf32>
    %2 = vector.extract_strided_slice %1 {offsets = [0, 0], sizes = [1, 128], strides = [1, 1]} : vector<2x128xf32> to vector<1x128xf32>
    %3 = vector.extract_strided_slice %1 {offsets = [1, 0], sizes = [1, 128], strides = [1, 1]} : vector<2x128xf32> to vector<1x128xf32>
    %c0_3 = arith.constant 0 : index
    %c0_4 = arith.constant 0 : index
    %4 = vector.load %arg3[%c0_3, %c0_4] : memref<136x32xf32, #tpu.memory_space<vmem>>, vector<136x32xf32>
    %c0_5 = arith.constant 0 : index
    %c0_6 = arith.constant 0 : index
    %5 = vector.load %arg4[%c0_5, %c0_6] : memref<88x1xf32, #tpu.memory_space<vmem>>, vector<88x1xf32>
    %6 = vector.extract_strided_slice %4 {offsets = [0, 0], sizes = [64, 32], strides = [1, 1]} : vector<136x32xf32> to vector<64x32xf32>
    %7 = vector.extract_strided_slice %5 {offsets = [0, 0], sizes = [32, 1], strides = [1, 1]} : vector<88x1xf32> to vector<32x1xf32>
    %cst = arith.constant dense<0.000000e+00> : vector<64x128xf32>
    %8 = tpu.matmul %6, %0, %cst {dimension_numbers = #tpu.dot_dimension_numbers<[1], [0], [0], [1], [0, 0, 1, 1], [], []>} : vector<64x32xf32>, vector<32x128xf32>, vector<64x128xf32> -> vector<64x128xf32>
    %9 = vector.extract_strided_slice %8 {offsets = [0, 0], sizes = [32, 128], strides = [1, 1]} : vector<64x128xf32> to vector<32x128xf32>
    %10 = vector.extract_strided_slice %8 {offsets = [32, 0], sizes = [16, 128], strides = [1, 1]} : vector<64x128xf32> to vector<16x128xf32>
    %c1_i32 = arith.constant 1 : i32
    %11 = tpu.dynamic_rotate %10 by %c1_i32 dim 1 : vector<16x128xf32>, i32 -> vector<16x128xf32>
    %12 = vector.broadcast %2 : vector<1x128xf32> to vector<16x128xf32>
    %13 = arith.mulf %11, %12 : vector<16x128xf32>
    %14 = vector.extract_strided_slice %8 {offsets = [48, 0], sizes = [16, 128], strides = [1, 1]} : vector<64x128xf32> to vector<16x128xf32>
    %c127_i32 = arith.constant 127 : i32
    %15 = tpu.dynamic_rotate %14 by %c127_i32 dim 1 : vector<16x128xf32>, i32 -> vector<16x128xf32>
    %16 = vector.broadcast %3 : vector<1x128xf32> to vector<16x128xf32>
    %17 = arith.mulf %15, %16 : vector<16x128xf32>
    %18 = vector.extract_strided_slice %9 {offsets = [0, 0], sizes = [16, 128], strides = [1, 1]} : vector<32x128xf32> to vector<16x128xf32>
    %19 = arith.addf %18, %13 : vector<16x128xf32>
    %20 = vector.extract_strided_slice %9 {offsets = [16, 0], sizes = [16, 128], strides = [1, 1]} : vector<32x128xf32> to vector<16x128xf32>
    %21 = arith.addf %20, %17 : vector<16x128xf32>
    %22 = tpu.concatenate %19, %21 in 0 : vector<16x128xf32>, vector<16x128xf32> -> vector<32x128xf32>
    %23 = vector.broadcast %7 : vector<32x1xf32> to vector<32x128xf32>
    %24 = arith.addf %22, %23 : vector<32x128xf32>
    %cst_7 = arith.constant 0.000000e+00 : f32
    %25 = vector.broadcast %cst_7 : f32 to vector<32x128xf32>
    %26 = arith.maximumf %24, %25 : vector<32x128xf32>
    %27 = vector.extract_strided_slice %4 {offsets = [64, 0], sizes = [48, 32], strides = [1, 1]} : vector<136x32xf32> to vector<48x32xf32>
    %28 = vector.extract_strided_slice %5 {offsets = [32, 0], sizes = [32, 1], strides = [1, 1]} : vector<88x1xf32> to vector<32x1xf32>
    %cst_8 = arith.constant dense<0.000000e+00> : vector<48x128xf32>
    %29 = tpu.matmul %27, %26, %cst_8 {dimension_numbers = #tpu.dot_dimension_numbers<[1], [0], [0], [1], [0, 0, 1, 1], [], []>} : vector<48x32xf32>, vector<32x128xf32>, vector<48x128xf32> -> vector<48x128xf32>
    %30 = vector.extract_strided_slice %29 {offsets = [0, 0], sizes = [32, 128], strides = [1, 1]} : vector<48x128xf32> to vector<32x128xf32>
    %31 = vector.extract_strided_slice %29 {offsets = [32, 0], sizes = [8, 128], strides = [1, 1]} : vector<48x128xf32> to vector<8x128xf32>
    %c1_i32_9 = arith.constant 1 : i32
    %32 = tpu.dynamic_rotate %31 by %c1_i32_9 dim 1 : vector<8x128xf32>, i32 -> vector<8x128xf32>
    %33 = vector.broadcast %2 : vector<1x128xf32> to vector<8x128xf32>
    %34 = arith.mulf %32, %33 : vector<8x128xf32>
    %35 = vector.extract_strided_slice %29 {offsets = [40, 0], sizes = [8, 128], strides = [1, 1]} : vector<48x128xf32> to vector<8x128xf32>
    %c127_i32_10 = arith.constant 127 : i32
    %36 = tpu.dynamic_rotate %35 by %c127_i32_10 dim 1 : vector<8x128xf32>, i32 -> vector<8x128xf32>
    %37 = vector.broadcast %3 : vector<1x128xf32> to vector<8x128xf32>
    %38 = arith.mulf %36, %37 : vector<8x128xf32>
    %39 = vector.extract_strided_slice %30 {offsets = [0, 0], sizes = [8, 128], strides = [1, 1]} : vector<32x128xf32> to vector<8x128xf32>
    %40 = arith.addf %39, %34 : vector<8x128xf32>
    %41 = vector.extract_strided_slice %30 {offsets = [8, 0], sizes = [16, 128], strides = [1, 1]} : vector<32x128xf32> to vector<16x128xf32>
    %42 = vector.extract_strided_slice %30 {offsets = [24, 0], sizes = [8, 128], strides = [1, 1]} : vector<32x128xf32> to vector<8x128xf32>
    %43 = arith.addf %42, %38 : vector<8x128xf32>
    %44 = tpu.concatenate %40, %41, %43 in 0 : vector<8x128xf32>, vector<16x128xf32>, vector<8x128xf32> -> vector<32x128xf32>
    %45 = vector.broadcast %28 : vector<32x1xf32> to vector<32x128xf32>
    %46 = arith.addf %44, %45 : vector<32x128xf32>
    %cst_11 = arith.constant 0.000000e+00 : f32
    %47 = vector.broadcast %cst_11 : f32 to vector<32x128xf32>
    %48 = arith.maximumf %46, %47 : vector<32x128xf32>
    %49 = vector.extract_strided_slice %4 {offsets = [112, 0], sizes = [24, 32], strides = [1, 1]} : vector<136x32xf32> to vector<24x32xf32>
    %50 = vector.extract_strided_slice %5 {offsets = [64, 0], sizes = [8, 1], strides = [1, 1]} : vector<88x1xf32> to vector<8x1xf32>
    %51 = vector.extract_strided_slice %5 {offsets = [72, 0], sizes = [8, 1], strides = [1, 1]} : vector<88x1xf32> to vector<8x1xf32>
    %52 = vector.extract_strided_slice %5 {offsets = [80, 0], sizes = [8, 1], strides = [1, 1]} : vector<88x1xf32> to vector<8x1xf32>
    %cst_12 = arith.constant dense<0.000000e+00> : vector<24x128xf32>
    %53 = tpu.matmul %49, %48, %cst_12 {dimension_numbers = #tpu.dot_dimension_numbers<[1], [0], [0], [1], [0, 0, 1, 1], [], []>} : vector<24x32xf32>, vector<32x128xf32>, vector<24x128xf32> -> vector<24x128xf32>
    %54 = vector.extract_strided_slice %53 {offsets = [0, 0], sizes = [8, 128], strides = [1, 1]} : vector<24x128xf32> to vector<8x128xf32>
    %55 = vector.extract_strided_slice %53 {offsets = [8, 0], sizes = [8, 128], strides = [1, 1]} : vector<24x128xf32> to vector<8x128xf32>
    %c1_i32_13 = arith.constant 1 : i32
    %56 = tpu.dynamic_rotate %55 by %c1_i32_13 dim 1 : vector<8x128xf32>, i32 -> vector<8x128xf32>
    %57 = vector.extract_strided_slice %56 {offsets = [0, 0], sizes = [1, 128], strides = [1, 1]} : vector<8x128xf32> to vector<1x128xf32>
    %58 = arith.mulf %57, %2 : vector<1x128xf32>
    %59 = vector.extract_strided_slice %53 {offsets = [16, 0], sizes = [8, 128], strides = [1, 1]} : vector<24x128xf32> to vector<8x128xf32>
    %c127_i32_14 = arith.constant 127 : i32
    %60 = tpu.dynamic_rotate %59 by %c127_i32_14 dim 1 : vector<8x128xf32>, i32 -> vector<8x128xf32>
    %61 = vector.extract_strided_slice %60 {offsets = [0, 0], sizes = [1, 128], strides = [1, 1]} : vector<8x128xf32> to vector<1x128xf32>
    %62 = arith.mulf %61, %3 : vector<1x128xf32>
    %63 = vector.broadcast %51 : vector<8x1xf32> to vector<8x128xf32>
    %64 = vector.broadcast %58 : vector<1x128xf32> to vector<8x128xf32>
    %65 = arith.mulf %63, %64 : vector<8x128xf32>
    %66 = arith.addf %54, %65 : vector<8x128xf32>
    %67 = vector.broadcast %52 : vector<8x1xf32> to vector<8x128xf32>
    %68 = vector.broadcast %62 : vector<1x128xf32> to vector<8x128xf32>
    %69 = arith.mulf %67, %68 : vector<8x128xf32>
    %70 = arith.addf %66, %69 : vector<8x128xf32>
    %71 = vector.broadcast %50 : vector<8x1xf32> to vector<8x128xf32>
    %72 = arith.addf %70, %71 : vector<8x128xf32>
    %cst_15 = arith.constant 0.000000e+00 : f32
    %73 = vector.broadcast %cst_15 : f32 to vector<8x128xf32>
    %74 = arith.subf %73, %72 : vector<8x128xf32>
    %75 = math.exp %74 : vector<8x128xf32>
    %cst_16 = arith.constant 1.000000e+00 : f32
    %76 = vector.broadcast %cst_16 : f32 to vector<8x128xf32>
    %77 = arith.addf %76, %75 : vector<8x128xf32>
    %cst_17 = arith.constant 1.000000e+00 : f32
    %78 = vector.broadcast %cst_17 : f32 to vector<8x128xf32>
    %79 = arith.divf %78, %77 : vector<8x128xf32>
    %c0_18 = arith.constant 0 : index
    %c0_19 = arith.constant 0 : index
    %80 = vector.load %arg5[%c0_18, %c0_19] : memref<8x128xf32, #tpu.memory_space<vmem>>, vector<8x128xf32>
    tpu.vector_store %arg5[%c0_18, %c0_19], %79 {strides = array<i32>} : memref<8x128xf32, #tpu.memory_space<vmem>>, vector<8x128xf32>,
    return
  }
  func.func @transform_0(%arg0: i32) -> (i32, i32) {
    %c0_i32 = arith.constant 0 : i32
    %c0_i32_0 = arith.constant 0 : i32
    return %c0_i32, %arg0 : i32, i32
  }
  func.func @transform_1(%arg0: i32) -> (i32, i32) {
    %c0_i32 = arith.constant 0 : i32
    %c0_i32_0 = arith.constant 0 : i32
    %c0_i32_1 = arith.constant 0 : i32
    return %c0_i32, %c0_i32_0 : i32, i32
  }
  func.func @transform_2(%arg0: i32) -> (i32, i32) {
    %c0_i32 = arith.constant 0 : i32
    %c0_i32_0 = arith.constant 0 : i32
    %c0_i32_1 = arith.constant 0 : i32
    return %c0_i32, %c0_i32_0 : i32, i32
  }
  func.func @transform_3(%arg0: i32) -> (i32, i32) {
    %c0_i32 = arith.constant 0 : i32
    %c0_i32_0 = arith.constant 0 : i32
    %c0_i32_1 = arith.constant 0 : i32
    return %c0_i32, %c0_i32_0 : i32, i32
  }
  func.func @transform_4(%arg0: i32) -> (i32, i32) {
    %c0_i32 = arith.constant 0 : i32
    %c0_i32_0 = arith.constant 0 : i32
    return %c0_i32, %arg0 : i32, i32
  }
}

</mosaic_0001>

<bundles_post_ra>
// kernel: tpu_custom_call.1
= control target key start
LH: loop header
LB: loop body
LE: loop exit
PB: predicated region body
PF: predicated region fallthrough
CT: control target
= control target key end

     0   :  { %vm51_vm0 = vcmask 261120   ;;  %v692_v6 = vmov 0   ;;  %s884_s0 = inlined_call_operand.vmem [shape: f32[32,128], index: 0, kind: input, shape index: {}]   ;;  %s885_s1 = inlined_call_operand.vmem [shape: f32[2,128], index: 1, kind: input, shape index: {}]   ;;  %s886_s2 = inlined_call_operand.vmem [shape: f32[136,32], index: 2, kind: input, shape index: {}]   ;;  %s887_s3 = inlined_call_operand.vmem [shape: f32[88,1], index: 3, kind: input, shape index: {}]   ;;  %s888_s4 = inlined_call_operand.hbm [shape: f32[8,128], index: 4, kind: output, shape index: {}]  }
   0x1   :  { %v18_v0 = vld [vmem:[%s884_s0] sm:$0xff]  ;;  %v19_v1 = vld [vmem:[%s884_s0 + $0x8] sm:$0xff]  ;;  %v20_v2 = vld [vmem:[%s884_s0 + $0x10] sm:$0xff]  ;;  %662 = vset.pattern.permute.xlu0 %v692_v6  ;;  %663 = vset.pattern.permute.xlu1 %v692_v6 }
   0x2   :  { %v629_v3 = vpack.c.bf16 %v19_v1, %v18_v0  ;;  %v21_v4 = vld [vmem:[%s884_s0 + $0x18] sm:$0xff]  ;;  %v23_v5 = vld [vmem:[%s886_s2] sm:$0xff] }
   0x3   :  { %v633_v7 = vpack.c.bf16 %v21_v4, %v20_v2  ;;  %583 = vmatprep.mubr.msk.f32.mxu0 %vm51_vm0, %v23_v5  ;;  %v40_v8 = vld [vmem:[%s887_s3] sm:$0xff]  ;;  %v43_v9 = vld [vmem:[%s887_s3 + $0x18] sm:$0xff] }
   0x4   :  { %630 = vmatprep.subr.bf16.mxu0 %v629_v3  ;;  %207 = vperm.xlu0 %662, %v40_v8  }
   0x5   :  { %632 = vmatpush3.bf16.msra.mxu0 %v629_v3 }
   0x6   :  { %634 = vmatprep.subr.bf16.mxu0 %v633_v7 }
   0x7   :  { %9 = vsyncpa [#allocation3], 0  ;;  %v41_v10 = vld [vmem:[%s887_s3 + $0x8] sm:$0xff]  ;;  %222 = vperm.xlu1 %663, %v43_v9   ;;  %v25_v12 = vld [vmem:[%s886_s2 + $0x10] sm:$0xff]  ;;  %s693_s20 = smov 1   ;;  %s694_s21 = smov 127   ;;  %v185_v32 = vlaneseq }
   0x8   :  { %v24_v11 = vld [vmem:[%s886_s2 + $0x8] sm:$0xff]  ;;  %212 = vperm.xlu0 %662, %v41_v10   ;;  %v42_v13 = vld [vmem:[%s887_s3 + $0x10] sm:$0xff]  ;;  %v26_v14 = vld [vmem:[%s886_s2 + $0x18] sm:$0xff]  ;;  %v695_v9 = vmov 0.0|0.0   ;;  %vm696_vm1 = vmmov 0  }
   0x9   :  { %636 = vmatpush3.bf16.msra.mxu0 %v633_v7  ;;  %v27_v15 = vld [vmem:[%s886_s2 + $0x20] sm:$0xff]  ;;  %v28_v16 = vld [vmem:[%s886_s2 + $0x28] sm:$0xff]  ;;  %v29_v17 = vld [vmem:[%s886_s2 + $0x30] sm:$0xff]  ;;  %v186_v34 = vshrl.u32 %v185_v32, 7 }
   0xa   :  { %v30_v18 = vld [vmem:[%s886_s2 + $0x38] sm:$0xff]  ;;  %v44_v27 = vld [vmem:[%s887_s3 + $0x20] sm:$0xff]  ;;  %v33_v29 = vld [vmem:[%s886_s2 + $0x50] sm:$0xff] }
   0xb   :  { %v31_v28 = vld [vmem:[%s886_s2 + $0x40] sm:$0xff]  ;;  %606 = vmatprep.mubr.msk.f32.mxu1 %vm51_vm0, %v33_v29  ;;  %v45_v30 = vld [vmem:[%s887_s3 + $0x28] sm:$0xff]  ;;  %v46_v31 = vld [vmem:[%s887_s3 + $0x30] sm:$0xff]  ;;  %v801_v35 = vsub.s32 0, %v186_v34  ;;  %v197_v40 = vsub.s32 1, %v186_v34 }
   0xc   :  { %584 = vmatmul.mubr.msk.f32.vlgmr.msra.gmra.mrb[0].mxu0 %vm51_vm0, %v24_v11  ;;  %217 = vperm.xlu0 %662, %v42_v13   ;;  %v806_v37 = vld [vmem:[%s885_s1] sm:$0x3]  ;;  %v32_v1 = vld [vmem:[%s886_s2 + $0x48] sm:$0xff]  ;;  %v34_v2 = vld [vmem:[%s886_s2 + $0x58] sm:$0xff] }
   0xd   :  { %586 = vmatprep.mubr.msk.f32.mxu0 %vm51_vm0, %v25_v12  ;;  %v810_v39 = vrot.slane %v806_v37, %v801_v35  ;;  %v814_v44 = vrot.slane %v806_v37, %v197_v40  ;;  %v35_v3 = vld [vmem:[%s886_s2 + $0x60] sm:$0xff]  ;;  %v36_v4 = vld [vmem:[%s886_s2 + $0x68] sm:$0xff]  ;;  %v50_v12 = vld [vmem:[%s887_s3 + $0x50] sm:$0xff] }
   0xe   :  { %v47_v13 = vld [vmem:[%s887_s3 + $0x38] sm:$0xff]  ;;  %v39_v40 = vld [vmem:[%s886_s2 + $0x80] sm:$0xff] }
  0x10   :  { %587 = vmatmul.mubr.msk.f32.gmra.mrb[2].mxu0 %vm51_vm0, %v26_v14  ;;  %v49_v14 = vld [vmem:[%s887_s3 + $0x48] sm:$0xff] }
  0x11   :  { %589 = vmatprep.mubr.msk.f32.mxu0 %vm51_vm0, %v27_v15  ;;  %v697_v15 = vmov 0.0  }
  0x14   :  { %590 = vmatmul.mubr.msk.f32.gmra.mrb[4].mxu0 %vm51_vm0, %v28_v16 }
  0x15   :  { %592 = vmatprep.mubr.msk.f32.mxu0 %vm51_vm0, %v29_v17 }
  0x18   :  { %593 = vmatmul.mubr.msk.f32.gmra.mrb[6].mxu0 %vm51_vm0, %v30_v18 }
  0x19   :  { %603 = vmatprep.mubr.msk.f32.mxu0 %vm51_vm0, %v31_v28 }
  0x83   :  { %v208_v33 = vpop.permute.xlu0 %207 }
  0x86   :  { %v223_v36 = vpop.permute.xlu1 %222 }
  0x87   :  { %v213_v38 = vpop.permute.xlu0 %212 }
  0x8b   :  { %v218_v42 = vpop.permute.xlu0 %217 }
  0xdf   :  { %v585_v19 = vpop.f32.mrb[0].mxu0 }
  0xe0   :  { %v142_v20 = vpop.f32.mrb[1].mxu0 }
  0xe3   :  { %v588_v21 = vpop.f32.mrb[2].mxu0 }
  0xe4   :  { %v152_v22 = vpop.f32.mrb[3].mxu0 }
  0xe7   :  { %v591_v23 = vpop.f32.mrb[4].mxu0 }
  0xe8   :  { %183 = vrot.lane.b32.xlu1 %v591_v23, %s693_s20  ;;  %v162_v24 = vpop.f32.mrb[5].mxu0 }
  0xeb   :  { %v594_v25 = vpop.f32.mrb[6].mxu0 }
  0xec   :  { %181 = vrot.lane.b32.xlu1 %v162_v24, %s693_s20  ;;  %v172_v26 = vpop.f32.mrb[7].mxu0 }
  0xed   :  { %191 = vrot.lane.b32.xlu0 %v172_v26, %s694_s21 }
  0xf0   :  { %193 = vrot.lane.b32.xlu1 %v594_v25, %s694_s21 }
  0xf1   :  { %356 = vperm.xlu0 %662, %v44_v27  }
  0xf4   :  { %361 = vperm.xlu1 %663, %v45_v30  }
  0xf8   :  { %366 = vperm.xlu1 %663, %v46_v31  }
 0x15a   :  { %v184_v41 = vpop.permute.xlu1 %183 }
 0x15b   :  { %v190_v43 = vmul.f32 %v810_v39, %v184_v41 }
 0x15d   :  { %v202_v45 = vadd.f32 %v585_v19, %v190_v43 }
 0x15e   :  { %v182_v46 = vpop.permute.xlu1 %181 }
 0x15f   :  { %v189_v47 = vmul.f32 %v810_v39, %v182_v46  ;;  %v192_v48 = vpop.permute.xlu0 %191  ;;  %v226_v50 = vadd.f32 %v213_v38, %v202_v45  ;;  %v37_v38 = vld [vmem:[%s886_s2 + $0x70] sm:$0xff]  ;;  %v48_v45 = vld [vmem:[%s887_s3 + $0x40] sm:$0xff] }
 0x160   :  { %v199_v49 = vmul.f32 %v814_v44, %v192_v48 }
 0x161   :  { %v201_v51 = vadd.f32 %v189_v47, %v142_v20  ;;  %v230_v56 = vmax.f32 %v226_v50, 0.0 }
 0x162   :  { %v203_v52 = vadd.f32 %v199_v49, %v152_v22  ;;  %v194_v53 = vpop.permute.xlu1 %193 }
 0x163   :  { %v225_v54 = vadd.f32 %v208_v33, %v201_v51  ;;  %v200_v55 = vmul.f32 %v814_v44, %v194_v53  ;;  %v477_v51 = vrot.slane %v806_v37, 1 }
 0x164   :  { %v227_v58 = vadd.f32 %v218_v42, %v203_v52 }
 0x165   :  { %v229_v57 = vmax.f32 %v225_v54, 0.0  ;;  %v204_v59 = vadd.f32 %v588_v21, %v200_v55 }
 0x166   :  { %v231_v62 = vmax.f32 %v227_v58, 0.0 }
 0x167   :  { %v637_v60 = vpack.c.bf16 %v230_v56, %v229_v57  ;;  %v228_v61 = vadd.f32 %v223_v36, %v204_v59 }
 0x169   :  { %v232_v63 = vmax.f32 %v228_v61, 0.0  ;;  %638 = vmatprep.subr.bf16.mxu0 %v637_v60  ;;  %651 = vmatprep.subr.bf16.mxu1 %v637_v60 }
 0x16a   :  { %640 = vmatpush3.bf16.msra.mxu0 %v637_v60  ;;  %653 = vmatpush3.bf16.msra.mxu1 %v637_v60 }
 0x16b   :  { %v641_v0 = vpack.c.bf16 %v232_v63, %v231_v62 }
 0x16d   :  { %642 = vmatprep.subr.bf16.mxu0 %v641_v0  ;;  %652 = vmatprep.subr.bf16.mxu1 %v641_v0 }
 0x16e   :  { %644 = vmatpush3.bf16.msra.mxu0 %v641_v0  ;;  %654 = vmatpush3.bf16.msra.mxu1 %v641_v0 }
 0x16f   :  { %645 = vmatprep.subr.bf16.mxu1 %v695_v9 }
 0x170   :  { %v357_v16 = vpop.permute.xlu0 %356 }
 0x171   :  { %604 = vmatmul.mubr.msk.f32.vlgmr.msra.gmra.mrb[8].mxu0 %vm51_vm0, %v32_v1  ;;  %607 = vmatmul.mubr.msk.f32.vlgmr.msra.gmra.mrb[0].mxu1 %vm51_vm0, %v34_v2 }
 0x172   :  { %609 = vmatprep.mubr.msk.f32.mxu1 %vm51_vm0, %v35_v3 }
 0x173   :  { %v362_v17 = vpop.permute.xlu1 %361 }
 0x175   :  { %610 = vmatmul.mubr.msk.f32.gmra.mrb[2].mxu1 %vm51_vm0, %v36_v4 }
 0x176   :  { %620 = vmatprep.mubr.msk.f32.mxu1 %vm696_vm1, %v697_v15 }
 0x177   :  { %v367_v22 = vpop.permute.xlu1 %366 }
 0x244   :  { %v605_v5 = vpop.f32.mrb[8].mxu0  ;;  %v608_v6 = vpop.f32.mrb[0].mxu1 }
 0x245   :  { %v327_v7 = vpop.f32.mrb[1].mxu1  ;;  %v317_v8 = vpop.f32.mrb[9].mxu0  ;;  %v375_v20 = vadd.f32 %v605_v5, %v362_v17 }
 0x246   :  { %v376_v29 = vadd.f32 %v367_v22, %v327_v7 }
 0x247   :  { %v379_v24 = vmax.f32 %v375_v20, 0.0 }
 0x248   :  { %v611_v10 = vpop.f32.mrb[2].mxu1  ;;  %v380_v33 = vmax.f32 %v376_v29, 0.0 }
 0x249   :  { %349 = vrot.lane.b32.xlu1 %v611_v10, %s694_s21  ;;  %v337_v11 = vpop.f32.mrb[3].mxu1 }
 0x24a   :  { %346 = vrot.lane.b32.xlu0 %v337_v11, %s693_s20 }
 0x24d   :  { %493 = vperm.xlu1 %663, %v50_v12  }
 0x24e   :  { %371 = vperm.xlu0 %662, %v47_v13  }
 0x252   :  { %482 = vperm.xlu0 %662, %v49_v14  }
 0x2bb   :  { %v350_v26 = vpop.permute.xlu1 %349 }
 0x2bc   :  { %v347_v18 = vpop.permute.xlu0 %346  ;;  %v351_v28 = vmul.f32 %v350_v26, %v814_v44 }
 0x2bd   :  { %v348_v19 = vmul.f32 %v347_v18, %v810_v39  ;;  %v38_v39 = vld [vmem:[%s886_s2 + $0x78] sm:$0xff]  ;;  %s698_s2 = smov [#allocation2]  }
 0x2be   :  { %v353_v30 = vadd.f32 %v608_v6, %v351_v28  ;;  %s521_s3 = sshll.u32 %s698_s2, 4  ;;  %s522_s3 = int_to_ptr.vmem [resolvable:$true] %s521_s3 }
 0x2bf   :  { %v352_v21 = vadd.f32 %v348_v19, %v317_v8  ;;  %p673_p1 = scmp.lt.s32.totalorder %s522_s3, %s522_s3 }
 0x2c1   :  { %v374_v23 = vadd.f32 %v357_v16, %v352_v21 }
 0x2c3   :  { %v378_v25 = vmax.f32 %v374_v23, 0.0 }
 0x2c5   :  { %v646_v27 = vpack.c.bf16 %v379_v24, %v378_v25 }
 0x2c7   :  { %647 = vmatpush3.bf16.msra.mxu1 %v646_v27 }
 0x2c8   :  { %648 = vmatprep.subr.bf16.mxu1 %v695_v9 }
 0x2cc   :  { %v494_v49 = vpop.permute.xlu1 %493 }
 0x2cd   :  { %v372_v31 = vpop.permute.xlu0 %371 }
 0x2ce   :  { %v377_v32 = vadd.f32 %v372_v31, %v353_v30 }
 0x2d0   :  { %v381_v34 = vmax.f32 %v377_v32, 0.0 }
 0x2d1   :  { %v483_v48 = vpop.permute.xlu0 %482 }
 0x2d2   :  { %v649_v36 = vpack.c.bf16 %v381_v34, %v380_v33 }
 0x2d4   :  { %650 = vmatpush3.bf16.msra.mxu1 %v649_v36 }
 0x2d7   :  { %621 = vmatmul.mubr.msk.f32.vlgmr.msra.gmra.mrb[4].mxu1 %vm51_vm0, %v37_v38 }
 0x2d8   :  { %623 = vmatprep.mubr.msk.f32.mxu1 %vm696_vm1, %v697_v15 }
 0x2db   :  { %624 = vmatmul.mubr.msk.f32.gmra.mrb[6].mxu1 %vm51_vm0, %v38_v39 }
 0x2dc   :  { %626 = vmatprep.mubr.msk.f32.mxu1 %vm696_vm1, %v697_v15 }
 0x2df   :  { %627 = vmatmul.mubr.msk.f32.gmra.mrb[8].mxu1 %vm51_vm0, %v39_v40 }
 0x3aa   :  { %v457_v41 = vpop.f32.mrb[4].mxu1 }
 0x3ab   :  { %v622_v42 = vpop.f32.mrb[5].mxu1 }
 0x3ae   :  { %v462_v43 = vpop.f32.mrb[6].mxu1 }
 0x3af   :  { %471 = vrot.lane.b32.xlu0 %v462_v43, %s693_s20  ;;  %v625_v44 = vpop.f32.mrb[7].mxu1  ;;  %s668_s20 = scalar_lea.vmem %s522_s3, 128 }
 0x3b0   :  { %p669_p0 = scmp.ne.s32.totalorder %s522_s3, %s668_s20  ;;  %p674_p2 = scmp.lt.s32.totalorder %s668_s20, %s668_s20 }
 0x3b2   :  { %v467_v46 = vpop.f32.mrb[8].mxu1  ;;  %p675_p3 = por %p674_p2, %p673_p1 }
 0x3b3   :  { %504 = vperm.xlu0 %662, %v48_v45   ;;  %474 = vrot.lane.b32.xlu1 %v467_v46, %s694_s21  ;;  %v628_v47 = vpop.f32.mrb[9].mxu1 }
 0x3b4   :  { %p676_p4 = pnand %p675_p3, %p669_p0 }
 0x421   :  { %v472_v50 = vpop.permute.xlu0 %471 }
 0x422   :  { %v473_v52 = vmul.f32 %v472_v50, %v806_v37 }
 0x424   :  { %v488_v55 = vrot.slane %v473_v52, %v801_v35 }
 0x425   :  { %v475_v53 = vpop.permute.xlu1 %474 }
 0x426   :  { %v479_v54 = vmul.f32 %v477_v51, %v475_v53  ;;  %v489_v57 = vmul.f32 %v488_v55, %v483_v48 }
 0x428   :  { %v499_v56 = vrot.slane %v479_v54, %v801_v35  ;;  %v490_v59 = vadd.f32 %v489_v57, %v457_v41 }
 0x42a   :  { %v500_v58 = vmul.f32 %v499_v56, %v494_v49 }
 0x42c   :  { %v501_v60 = vadd.f32 %v500_v58, %v490_v59 }
 0x432   :  { %v505_v61 = vpop.permute.xlu0 %504 }
 0x433   :  { %v507_v62 = vadd.f32 %v505_v61, %v501_v60 }
 0x435   :  { %v508_v63 = vsub.f32 0.0, %v507_v62 }
 0x437   :  { %v509_v0 = vmul.f32 1.442695, %v508_v63 }
 0x439   :  { %664 = vpow2.f32 %v509_v0 }
 0x443   :  { %v665_v1 = vpop.eup %664 }
 0x444   :  { %v511_v2 = vadd.f32 1.0, %v665_v1 }
 0x446   :  { %666 = vrcp.f32 %v511_v2 }
 0x450   :  { %v667_v37 = vpop.eup %666 }
 0x451   :  { %514 = vst [vmem:[#allocation2] sm:$0xff] %v667_v37 }
 0x452   :  { %679 = shalt.err (!%p676_p4)
}
 0x453   :  { %s680_s30 = scalar_lea.hbm %s888_s4, 128 }
 0x454   :  { %p681_p5 = scmp.ne.s32.totalorder %s888_s4, %s680_s30  ;;  %p684_p6 = scmp.lt.u32.totalorder %s680_s30, %s888_s4 }
 0x456   :  { %p686_p7 = pnand %p684_p6, %p681_p5 }
 0x458   :  { %689 = shalt.err (!%p686_p7)
}
 0x459   :  { %524 = dma.vmem_to_hbm [thread:$0]  %s522_s3, 128, %s888_s4, [#allocation3]  }
 0x45a   :  { %690 = dma.done.wait [#allocation3], 128  }
 0x45b   :  { %691 = vsyncadd [#allocation3], 4294967168 }
 0x45c   :  { %528 = vsyncpa [#allocation3], 1 }

</bundles_post_ra>
